<compile_context>
chip_gen: v7x
topology: tpu7x:2x2x1
jax: 0.10.0
libtpu: 0.0.40
codegen_flags: <defaults>
</compile_context>

<pallas_src>
import functools

import jax
import jax.numpy as jnp
from jax import lax
from jax.experimental import pallas as pl
from jax.experimental.pallas import tpu as pltpu

block_size = 32      # max sequence length (causal mask buffer size)
n_embd = 464
head_size = 16

LANE = 128           # TPU lane width; each projection gets one lane-aligned slot


def _round_up(x, m):
    return ((x + m - 1) // m) * m


def prepare_head_params(wk, wq, wv):
    """One-time (init-style) parameter prep. wk/wq/wv: (C, H) f32 (PyTorch W.T).

    Returns a fused bf16 weight of shape (C_pad, 3*128) with
      [:,   0:H   ] = Wk,  [:, 128:128+H] = Wq,  [:, 256:256+H] = Wv,
    zeros elsewhere (feature padding rows C..C_pad and lane padding H..128).
    """
    C, H = wk.shape
    assert wq.shape == (C, H) and wv.shape == (C, H)
    assert H <= LANE
    c_pad = _round_up(C, LANE)                       # 464 -> 512
    w = jnp.zeros((c_pad, 3 * LANE), dtype=jnp.bfloat16)
    w = w.at[:C, 0 * LANE:0 * LANE + H].set(wk.astype(jnp.bfloat16))
    w = w.at[:C, 1 * LANE:1 * LANE + H].set(wq.astype(jnp.bfloat16))
    w = w.at[:C, 2 * LANE:2 * LANE + H].set(wv.astype(jnp.bfloat16))
    return w


def head_kernel(x_ref, w_ref, o_ref, *, scale):
    # x_ref: (Bb, T, Cp) bf16 ; w_ref: (Cp, 3*128) bf16 ; o_ref: (Bb, T, 128) f32
    Bb, T, Cp = x_ref.shape

    # ---- fused QKV projection: one (Bb*T, Cp) x (Cp, 384) bf16 MXU matmul ----
    # (leading-dim collapse only: no relayout, inputs already bf16 -> no VPU cast)
    x2 = x_ref[...].reshape(Bb * T, Cp)
    qkv = jnp.dot(x2, w_ref[...], preferred_element_type=jnp.float32)   # f32 accum

    # 128-lane-aligned slices -> zero-cost views (no lane-granularity selects).
    # Columns H..127 of each slot are exactly zero (zero-padded weight).
    k = qkv[:, 0 * LANE:1 * LANE].reshape(Bb, T, LANE)
    q = qkv[:, 1 * LANE:2 * LANE].reshape(Bb, T, LANE)
    v = qkv[:, 2 * LANE:3 * LANE].reshape(Bb, T, LANE)

    # ---- scaled scores + causal mask + softmax ----
    # Zero-padded head columns contribute nothing to the contraction -> exact.
    # scale uses the TRUE n_embd (464), baked in by the wrapper.
    wei = jnp.einsum("bqh,bkh->bqk", q, k,
                     preferred_element_type=jnp.float32) * scale        # (Bb, T, T)
    row = lax.broadcasted_iota(jnp.int32, (T, T), 0)
    col = lax.broadcasted_iota(jnp.int32, (T, T), 1)
    wei = jnp.where((col <= row)[None, :, :], wei, -1e30)               # finite "-inf"

    wei_max = jnp.max(wei, axis=-1, keepdims=True)
    p = jnp.exp(wei - wei_max)
    denom = jnp.sum(p, axis=-1, keepdims=True)
    p = p * pl.reciprocal(denom, approx=True)        # EUP slot, otherwise idle

    # ---- out = wei @ v ----
    # v's padded columns are zero -> out's padded columns are zero; writing the
    # full 128-wide slab keeps the store lane-dense (unmasked vst); the wrapper
    # slices off columns H..127.
    out = jnp.einsum("bqk,bkh->bqh", p, v, preferred_element_type=jnp.float32)
    o_ref[...] = out.astype(o_ref.dtype)


def head_forward(x, w_qkv, head_size):
    """x: (B, T, C) f32; w_qkv: prepared (C_pad, 3*128) bf16 -> (B, T, head_size) f32."""
    B, T, C = x.shape
    c_pad = w_qkv.shape[0]
    assert T <= block_size, "sequence length must not exceed block_size"
    assert C <= c_pad and w_qkv.shape[1] == 3 * LANE and head_size <= LANE

    # bf16 + feature-pad once at the boundary (halves x DMA, aligned lane tiles).
    x_p = x.astype(jnp.bfloat16)
    if c_pad != C:
        x_p = jnp.pad(x_p, ((0, 0), (0, 0), (0, c_pad - C)))

    # Batch-block selection:
    #  * cap the bf16 x block at ~4 MiB -> double-buffered 8 MiB plus f32 temps
    #    stays well inside the explicit 32 MiB vmem_limit on every generation;
    #  * cdiv grid: ragged last block is handled by Pallas (OOB writes masked,
    #    and rows are independent so padded-read garbage cannot contaminate);
    #  * split an all-in-one even batch into 2 parallel steps so both v7x
    #    TensorCores get work (costs one ~0.35us step on single-core chips).
    max_block_bytes = 4 * 1024 * 1024
    bytes_per_batch_row = T * c_pad * x_p.dtype.itemsize
    batch_block = max(1, min(B, max_block_bytes // bytes_per_batch_row))
    if batch_block == B and B >= 2 and B % 2 == 0:
        batch_block = B // 2
    n_steps = -(-B // batch_block)

    kernel = functools.partial(head_kernel, scale=float(C) ** -0.5)

    grid_spec = pltpu.PrefetchScalarGridSpec(
        num_scalar_prefetch=0,
        grid=(n_steps,),
        in_specs=[
            pl.BlockSpec((batch_block, T, c_pad), lambda i: (i, 0, 0)),
            pl.BlockSpec((c_pad, 3 * LANE), lambda i: (0, 0)),   # constant weight block
        ],
        out_specs=pl.BlockSpec((batch_block, T, LANE), lambda i: (i, 0, 0)),
    )

    out = pl.pallas_call(
        kernel,
        out_shape=jax.ShapeDtypeStruct((B, T, LANE), jnp.float32),
        grid_spec=grid_spec,
        compiler_params=pltpu.CompilerParams(
            dimension_semantics=("parallel",),
            vmem_limit_bytes=32 * 1024 * 1024),
    )(x_p, w_qkv)

    return out[..., :head_size]


def reference_forward(x, wk, wq, wv):
    """Pure-JAX fp32 reference matching the PyTorch module (eval mode)."""
    B, T, C = x.shape
    k = x @ wk
    q = x @ wq
    v = x @ wv
    wei = jnp.einsum("bth,bsh->bts", q, k) * (C ** -0.5)
    mask = jnp.tril(jnp.ones((T, T), dtype=bool))
    wei = jnp.where(mask[None], wei, -jnp.inf)
    wei = jax.nn.softmax(wei, axis=-1)
    return jnp.einsum("bts,bsh->bth", wei, v)


if __name__ == "__main__":
    key = jax.random.PRNGKey(0)
    kx, kk, kq, kv = jax.random.split(key, 4)

    B, T, C, H = 2, 8, n_embd, head_size     # T=8 <= block_size=32

    x = jax.random.normal(kx, (B, T, C), dtype=jnp.float32)
    # deterministic linear weights (stored (C, H) == PyTorch weight.T)
    wscale = 1.0 / (C ** 0.5)
    wk = jax.random.normal(kk, (C, H), dtype=jnp.float32) * wscale
    wq = jax.random.normal(kq, (C, H), dtype=jnp.float32) * wscale
    wv = jax.random.normal(kv, (C, H), dtype=jnp.float32) * wscale

    # One-time (init-style) weight fusion / padding / bf16 cast.
    w_qkv = prepare_head_params(wk, wq, wv)

    out = head_forward(x, w_qkv, head_size=H)
    out = jax.block_until_ready(out)

    ref = reference_forward(x, wk, wq, wv)
    assert out.shape == (B, T, H)
    # Projection (and EUP reciprocal) run in reduced precision on purpose:
    # bf16 MXU inputs with fp32 accumulation -> loosened tolerance vs the
    # pure-fp32 reference.
    assert jnp.allclose(out, ref, atol=5e-2, rtol=5e-2), "mismatch vs reference"

    print("KERNEL_OK")
</pallas_src>

<mosaic_0001>
module attributes {stable_mosaic.version = 11 : i64} {
  func.func @head_kernel(%arg0: i32, %arg1: memref<1x8x512xbf16, #tpu.memory_space<vmem>>, %arg2: memref<512x384xbf16, #tpu.memory_space<vmem>>, %arg3: memref<1x8x128xf32, #tpu.memory_space<vmem>>) attributes {dimension_semantics = [#tpu.dimension_semantics<parallel>], iteration_bounds = array<i64: 2>, scalar_prefetch = 0 : i64, scratch_operands = 0 : i64, tpu.core_type = #tpu.core_type<tc>, window_params = [{transform_indices = @transform_0, window_bounds = array<i64: 1, 8, 512>}, {pipeline_mode = #tpu.pipeline_mode<synchronous>, transform_indices = @transform_1, window_bounds = array<i64: 512, 384>}, {transform_indices = @transform_2, window_bounds = array<i64: 1, 8, 128>}]} {
    %c0 = arith.constant 0 : index
    %c0_0 = arith.constant 0 : index
    %c0_1 = arith.constant 0 : index
    %0 = vector.load %arg1[%c0, %c0_0, %c0_1] : memref<1x8x512xbf16, #tpu.memory_space<vmem>>, vector<1x8x512xbf16>
    %1 = vector.shape_cast %0 : vector<1x8x512xbf16> to vector<8x512xbf16>
    %c0_2 = arith.constant 0 : index
    %c0_3 = arith.constant 0 : index
    %2 = vector.load %arg2[%c0_2, %c0_3] : memref<512x384xbf16, #tpu.memory_space<vmem>>, vector<512x384xbf16>
    %cst = arith.constant dense<0.000000e+00> : vector<8x384xf32>
    %3 = tpu.matmul %1, %2, %cst {dimension_numbers = #tpu.dot_dimension_numbers<[1], [0], [0], [1], [0, 0, 1, 1], [], []>} : vector<8x512xbf16>, vector<512x384xbf16>, vector<8x384xf32> -> vector<8x384xf32>
    %4 = vector.extract_strided_slice %3 {offsets = [0, 0], sizes = [8, 128], strides = [1, 1]} : vector<8x384xf32> to vector<8x128xf32>
    %5 = vector.shape_cast %4 : vector<8x128xf32> to vector<1x8x128xf32>
    %6 = vector.extract_strided_slice %3 {offsets = [0, 128], sizes = [8, 128], strides = [1, 1]} : vector<8x384xf32> to vector<8x128xf32>
    %7 = vector.shape_cast %6 : vector<8x128xf32> to vector<1x8x128xf32>
    %8 = vector.extract_strided_slice %3 {offsets = [0, 256], sizes = [8, 128], strides = [1, 1]} : vector<8x384xf32> to vector<8x128xf32>
    %9 = vector.shape_cast %8 : vector<8x128xf32> to vector<1x8x128xf32>
    "tpu.trace_start"() <{level = 10 : i32, message = "bqh,bkh->bqk"}> : () -> ()
    %cst_4 = arith.constant dense<0.000000e+00> : vector<1x8x8xf32>
    %10 = tpu.matmul %7, %5, %cst_4 {dimension_numbers = #tpu.dot_dimension_numbers<[2], [2], [1], [1], [0, 0, 0, 1, 1, 1], [0], [0]>} : vector<1x8x128xf32>, vector<1x8x128xf32>, vector<1x8x8xf32> -> vector<1x8x8xf32>
    "tpu.trace_stop"() : () -> ()
    %cst_5 = arith.constant 0.0464238338 : f32
    %11 = vector.broadcast %cst_5 : f32 to vector<1x8x8xf32>
    %12 = arith.mulf %10, %11 : vector<1x8x8xf32>
    %13 = tpu.iota {dimensions = array<i32: 0>} : vector<8x8xi32>
    %14 = tpu.iota {dimensions = array<i32: 1>} : vector<8x8xi32>
    %15 = arith.cmpi sle, %14, %13 : vector<8x8xi32>
    %16 = vector.shape_cast %15 : vector<8x8xi1> to vector<1x8x8xi1>
    %cst_6 = arith.constant -1.000000e+30 : f32
    %17 = vector.broadcast %cst_6 : f32 to vector<1x8x8xf32>
    %18 = arith.select %16, %12, %17 : vector<1x8x8xi1>, vector<1x8x8xf32>
    %cst_7 = arith.constant dense<0xFF800000> : vector<1x8xf32>
    %19 = vector.multi_reduction <maximumf>, %18, %cst_7 [2] : vector<1x8x8xf32> to vector<1x8xf32>
    %20 = vector.shape_cast %19 : vector<1x8xf32> to vector<1x8x1xf32>
    %21 = vector.broadcast %20 : vector<1x8x1xf32> to vector<1x8x8xf32>
    %22 = arith.subf %18, %21 : vector<1x8x8xf32>
    %23 = math.exp %22 : vector<1x8x8xf32>
    %cst_8 = arith.constant dense<0.000000e+00> : vector<1x8xf32>
    %24 = vector.multi_reduction <add>, %23, %cst_8 [2] : vector<1x8x8xf32> to vector<1x8xf32>
    %25 = vector.shape_cast %24 : vector<1x8xf32> to vector<1x8x1xf32>
    %26 = tpu.reciprocal %25 {approx = true} : vector<1x8x1xf32> -> vector<1x8x1xf32>
    %27 = vector.broadcast %26 : vector<1x8x1xf32> to vector<1x8x8xf32>
    %28 = arith.mulf %23, %27 : vector<1x8x8xf32>
    "tpu.trace_start"() <{level = 10 : i32, message = "bqk,bkh->bqh"}> : () -> ()
    %cst_9 = arith.constant dense<0.000000e+00> : vector<1x8x128xf32>
    %29 = tpu.matmul %28, %9, %cst_9 {dimension_numbers = #tpu.dot_dimension_numbers<[2], [1], [1], [2], [0, 0, 0, 1, 1, 2], [0], [0]>} : vector<1x8x8xf32>, vector<1x8x128xf32>, vector<1x8x128xf32> -> vector<1x8x128xf32>
    "tpu.trace_stop"() : () -> ()
    %c0_10 = arith.constant 0 : index
    %c0_11 = arith.constant 0 : index
    %c0_12 = arith.constant 0 : index
    %30 = vector.load %arg3[%c0_10, %c0_11, %c0_12] : memref<1x8x128xf32, #tpu.memory_space<vmem>>, vector<1x8x128xf32>
    tpu.vector_store %arg3[%c0_10, %c0_11, %c0_12], %29 {strides = array<i32>} : memref<1x8x128xf32, #tpu.memory_space<vmem>>, vector<1x8x128xf32>,
    return
  }
  func.func @transform_0(%arg0: i32) -> (i32, i32, i32) {
    %c0_i32 = arith.constant 0 : i32
    %c0_i32_0 = arith.constant 0 : i32
    %c0_i32_1 = arith.constant 0 : i32
    return %arg0, %c0_i32, %c0_i32_0 : i32, i32, i32
  }
  func.func @transform_1(%arg0: i32) -> (i32, i32) {
    %c0_i32 = arith.constant 0 : i32
    %c0_i32_0 = arith.constant 0 : i32
    %c0_i32_1 = arith.constant 0 : i32
    return %c0_i32, %c0_i32_0 : i32, i32
  }
  func.func @transform_2(%arg0: i32) -> (i32, i32, i32) {
    %c0_i32 = arith.constant 0 : i32
    %c0_i32_0 = arith.constant 0 : i32
    %c0_i32_1 = arith.constant 0 : i32
    return %arg0, %c0_i32, %c0_i32_0 : i32, i32, i32
  }
}

</mosaic_0001>

<bundles_post_ra>
// kernel: tpu_custom_call.1
= control target key start
LH: loop header
LB: loop body
LE: loop exit
PB: predicated region body
PF: predicated region fallthrough
CT: control target
= control target key end

     0   :  { %7 = vsyncpa [#allocation3], 0  ;;  %s1994_s0 = inlined_call_operand.hbm [shape: bf16[2,8,512], index: 0, kind: input, shape index: {}]   ;;  %s1995_s1 = inlined_call_operand.hbm [shape: bf16[512,384], index: 1, kind: input, shape index: {}]   ;;  %s1996_s2 = inlined_call_operand.hbm [shape: f32[2,8,128], index: 2, kind: output, shape index: {}]  }
   0x1   :  { %9 = vsyncpa [#allocation3 + $0x1], 0 }
   0x2   :  { %10 = vsyncpa [#allocation6], 0 }
   0x3   :  { %11 = vsyncpa [#allocation4], 0 }
   0x4   :  { %13 = vsyncpa [#allocation4 + $0x1], 0  ;;  %s1779_s9 = smov 0   ;;  %s1781_s10 = smov 0  }
   0x5   :  { %s1783_s11 = smov 0   ;;  %s1785_s12 = smov 0  }
   0x6 LB: > { %s1800_s13 = sadd.s32 4294967295, %s1755_s12   ;;  %s1251_s14 = sadd.s32 4294967294, %s1755_s12   ;;  %s1755_s12 = sphi %s1785_s12, %s2016_s12   ;;  %s1751_s11 = sphi %s1783_s11, %s2015_s11   ;;  %s1747_s10 = sphi %s1781_s10, %s2014_s10   ;;  %s1743_s9 = sphi %s1779_s9, %s2013_s9  }
   0x7   : > { %p39_p0 = scmp.ne.s32.totalorder %s1747_s10, %s1743_s9  ;;  %p1997_p1 = scmp.eq.s32.totalorder %s1800_s13, 0 }
   0x8   : > { %p90_p3 = scmp.eq.s32.totalorder %s1251_s14, 1  ;;  %p1252_p5 = scmp.ge.s32.totalorder %s1755_s12, 1 }
   0x9   : > { %p1809_p4 = por %p1997_p1, %p39_p0  ;;  %p97_p7 = scmp.lt.s32.totalorder %s1755_s12, 3 }
   0xa   : > { %p1814_p6 = por %p90_p3, %p39_p0  ;;  %s1757_s18 = smov [#allocation5]  }
   0xb   : > { %s2000_s15 = scalar_select %p1809_p4, 1, 0 }
   0xc   : > { %s2001_s16 = scalar_select %p1814_p6, 1, 0 }
   0xd   : > { %p1819_p8 = pnand %p1252_p5, %p97_p7  ;;  %s109_s19 = sshll.u32 %s1757_s18, 4  ;;  %s1823_s19 = int_to_ptr.vmem [resolvable:$true] %s109_s19 }
   0xe   : > { %s1835_s21 = sadd.s32 1, %s1755_s12   ;;  %s26_s22 = sadd.s32 1, %s1751_s11 }
   0xf   : > { %s2002_s17 = scalar_select %p1819_p8, 1, 0 }
  0x10   : > { %p1438_p9 = pneg %p1819_p8  ;;  %s23_s23 = ssub.s32 %s1755_s12, %s1835_s21 }
  0x11   : > { %s1627_s26 = scalar_lea.hbm %s1995_s1, 12288 }
  0x12   : > { %p1830_p11 = pnand %p1438_p9, %p1997_p1  ;;  %p1628_p12 = scmp.ne.s32.totalorder %s1995_s1, %s1627_s26 }
  0x13   : > { %p1634_p5 = scmp.lt.u32.totalorder %s1627_s26, %s1995_s1 }
  0x14   : > { %p1629_p13 = pneg %p1830_p11 }
  0x16   : > { %p1630_p0 = pnand %p1629_p13, %p1628_p12 }
  0x18   : > { %p1631_p3 = pneg %p1630_p0 }
  0x1a   : > { %p1636_p7 = pnand %p1634_p5, %p1631_p3 }
  0x1c   : > { %1639 = shalt.err (!%p1636_p7)
}
  0x1d   : > { %s1640_s3 = scalar_lea.vmem %s1823_s19, 12288  ;;  %p1648_p2 = scmp.lt.s32.totalorder %s1823_s19, %s1823_s19 }
  0x1e   : > { %p1641_p9 = scmp.ne.s32.totalorder %s1823_s19, %s1640_s3  ;;  %p1649_p6 = scmp.lt.s32.totalorder %s1640_s3, %s1640_s3 }
  0x20   : > { %p1643_p10 = pnand %p1641_p9, %p1629_p13  ;;  %p1650_p4 = por %p1649_p6, %p1648_p2 }
  0x22   : > { %p1644_p1 = pneg %p1643_p10 }
  0x24   : > { %p1651_p8 = pnand %p1650_p4, %p1644_p1 }
  0x26   : > { %1654 = shalt.err (!%p1651_p8)
}
  0x27   : > { %s1758_s4 = smov 192   ;;  %s1759_s5 = smov 12  }
  0x28   : > { %1441 = dma.hbm_to_vmem [thread:$0]  (!%p1830_p11), %s1995_s1, 12288, %s1823_s19, [#allocation6], %s1758_s4, %s1758_s4, %s1759_s5  }
  0x29   : > { %p24_p2 = scmp.eq.s32.totalorder %s23_s23, 0  ;;  %p33_p1 = scmp.ne.s32.totalorder %s1751_s11, %s1747_s10 }
  0x2a   : > { %p34_p4 = scmp.eq.s32.totalorder %s1755_s12, 0  ;;  %p1451_p6 = scmp.lt.s32.totalorder %s1755_s12, 2 }
  0x2b   : > { %s1866_s8 = scalar_select %p24_p2, %s1751_s11, %s26_s22  }
  0x2c   : > { %p35_p8 = por %p34_p4, %p33_p1  ;;  %p2004_p10 = scmp.eq.s32.totalorder %s1800_s13, 1 }
  0x2d   : > { %s123_s18 = sand.u32 1, %s1751_s11   ;;  %s1367_s24 = sshll.u32 %s1755_s12, 8 }
  0x2e   : > { %p1870_p12 = por %p2004_p10, %p33_p1  ;;  %s1255_s25 = sshll.u32 %s123_s18, 4 }
  0x2f   : > { %s1879_s27 = scalar_lea.hbm %s1994_s0, %s1367_s24  ;;  %s127_s19 = scalar_lea.vmem [#allocation2], %s1255_s25 }
  0x30   : > { %s135_s22 = sshll.u32 %s127_s19, 4  ;;  %p1881_p11 = pnand %p1451_p6, %p35_p8  ;;  %s1885_s22 = int_to_ptr.vmem [resolvable:$true] %s135_s22 }
  0x31   : > { %s124_s28 = scalar_lea.sflag [#allocation3], %s123_s18  ;;  %s1655_s29 = scalar_lea.hbm %s1879_s27, 256 }
  0x32   : > { %p1656_p13 = scmp.ne.s32.totalorder %s1879_s27, %s1655_s29  ;;  %p1657_p0 = pneg %p1881_p11 }
  0x33   : > { %s1660_s4 = scalar_lea.hbm %s1994_s0, 512  ;;  %p1661_p7 = scmp.lt.u32.totalorder %s1879_s27, %s1994_s0 }
  0x34   : > { %p1658_p3 = pnand %p1657_p0, %p1656_p13  ;;  %p1662_p9 = scmp.lt.u32.totalorder %s1660_s4, %s1655_s29 }
  0x35   : > { %p1664_p1 = scmp.lt.u32.totalorder %s1655_s29, %s1879_s27 }
  0x36   : > { %p1659_p5 = pneg %p1658_p3  ;;  %p1663_p2 = por %p1662_p9, %p1661_p7 }
  0x38   : > { %p1665_p4 = por %p1664_p1, %p1663_p2 }
  0x3a   : > { %p1666_p6 = pnand %p1665_p4, %p1659_p5 }
  0x3c   : > { %1669 = shalt.err (!%p1666_p6)
}
  0x3d   : > { %s1670_s7 = scalar_lea.vmem %s1885_s22, 256  ;;  %s1760_s18 = smov [#allocation2]  }
  0x3e   : > { %p1671_p8 = scmp.ne.s32.totalorder %s1885_s22, %s1670_s7  ;;  %s1675_s24 = sshll.u32 %s1760_s18, 4  ;;  %s1676_s24 = int_to_ptr.vmem [resolvable:$false] %s1675_s24 }
  0x3f   : > { %s1677_s25 = scalar_lea.vmem %s1676_s24, 512  ;;  %p1678_p3 = scmp.lt.s32.totalorder %s1885_s22, %s1676_s24 }
  0x40   : > { %p1673_p10 = pnand %p1671_p8, %p1657_p0  ;;  %p1679_p7 = scmp.lt.s32.totalorder %s1677_s25, %s1670_s7 }
  0x42   : > { %p1674_p13 = pneg %p1673_p10  ;;  %p1680_p9 = por %p1679_p7, %p1678_p3 }
  0x44   : > { %p1681_p2 = pnand %p1680_p9, %p1674_p13 }
  0x46   : > { %1684 = shalt.err (!%p1681_p2)
}
  0x47   : > { %1445 = dma.hbm_to_vmem [thread:$0]  (!%p1881_p11), %s1879_s27, 256, %s1885_s22, %s124_s28  }
  0x48   : > { %p2007_p5 = scmp.ne.s32.totalorder %s2002_s17, 0 }
  0x49   : > { %s1915_s20 = sand.u32 (!%p2007_p5), 1, %s1747_s10   ;;  %p2008_p0 = scmp.ne.s32.totalorder (!%p2007_p5), %s2000_s15, 0 }
  0x4a   : > { %144 = sbr.rel (%p2007_p5) target bundleno = 1184 (0x4a0), region = 28  ;;  %s1259_s26 = sshll.u32 (!%p2007_p5), %s1915_s20, 4 }
  0x4b   : > { %s147_s19 = scalar_lea.sflag (!%p2007_p5), [#allocation3], %s1915_s20  ;;  %s1919_s29 = scalar_lea.vmem (!%p2007_p5), [#allocation2], %s1259_s26 }
  0x51   : > { %1730 = dma.done.wait (%p2008_p0), %s147_s19, 256  }
  0x52   : > { %1732 = vsyncadd (%p2008_p0), %s147_s19, 4294967040  ;;  %p2009_p11 = scmp.eq.s32.totalorder %s1800_s13, 0 }
  0x54   : > { %1734 = dma.done.wait (%p2009_p11), [#allocation6], 12288   ;;  %p2010_p1 = pmov %p2009_p11 }
  0x55   : > { %v1491_v0 = vld [vmem:[#allocation5 + $0x4] ss:$12 sps:$4 sm:$0xff]   ;;  %v1493_v1 = vld [vmem:[#allocation5] ss:$12 sps:$4 sm:$0xff]   ;;  %v1494_v2 = vld [vmem:[#allocation5 + $0x1c] ss:$12 sps:$4 sm:$0xff]  }
  0x56   : > { %1736 = vsyncadd (%p2010_p1), [#allocation6], 4294955008  ;;  %832 = vmatprep.subr.bf16.mxu0 %v1491_v0  ;;  %v1496_v3 = vld [vmem:[#allocation5 + $0x18] ss:$12 sps:$4 sm:$0xff]   ;;  %v1497_v4 = vld [vmem:[#allocation5 + $0x34] ss:$12 sps:$4 sm:$0xff]  }
  0x57   : > { %833 = vmatpush1.bf16.msra.mxu0 %v1493_v1  ;;  %v1499_v5 = vld [vmem:[#allocation5 + $0x30] ss:$12 sps:$4 sm:$0xff]   ;;  %v1500_v6 = vld [vmem:[#allocation5 + $0x4c] ss:$12 sps:$4 sm:$0xff]   ;;  %v1502_v7 = vld [vmem:[#allocation5 + $0x48] ss:$12 sps:$4 sm:$0xff]  }
  0x58   : > { %834 = vmatprep.subr.bf16.mxu0 %v1494_v2  ;;  %v1503_v8 = vld [vmem:[#allocation5 + $0x64] ss:$12 sps:$4 sm:$0xff]   ;;  %v1505_v9 = vld [vmem:[#allocation5 + $0x60] ss:$12 sps:$4 sm:$0xff]   ;;  %v1506_v10 = vld [vmem:[#allocation5 + $0x7c] ss:$12 sps:$4 sm:$0xff]  }
  0x59   : > { %v1508_v11 = vld [vmem:[#allocation5 + $0x78] ss:$12 sps:$4 sm:$0xff]   ;;  %v1509_v12 = vld [vmem:[#allocation5 + $0x94] ss:$12 sps:$4 sm:$0xff]   ;;  %v1511_v15 = vld [vmem:[#allocation5 + $0x90] ss:$12 sps:$4 sm:$0xff]  }
  0x5a   : > { %v1930_v13 = vld [vmem:[%s1919_s29] sm:$0xff]  ;;  %v1512_v16 = vld [vmem:[#allocation5 + $0xac] ss:$12 sps:$4 sm:$0xff]   ;;  %v1518_v20 = vld [vmem:[#allocation5 + $0xdc] ss:$12 sps:$4 sm:$0xff]   ;;  %vm1762_vm0 = vmmov 0  }
  0x5b   : > { %835 = vmatpush1.bf16.msra.mxu0 %v1496_v3  ;;  %v1263_v14 = vcombine.high %v1930_v13, %v1930_v13  ;;  %v1514_v17 = vld [vmem:[#allocation5 + $0xa8] ss:$12 sps:$4 sm:$0xff]   ;;  %v1515_v18 = vld [vmem:[#allocation5 + $0xc4] ss:$12 sps:$4 sm:$0xff]   ;;  %v1517_v19 = vld [vmem:[#allocation5 + $0xc0] ss:$12 sps:$4 sm:$0xff]   ;;  %v1262_v47 = vcombine.low %v1930_v13, %v1930_v13 }
  0x5c   : > { %836 = vmatprep.subr.bf16.mxu0 %v1497_v4  ;;  %v1520_v21 = vld [vmem:[#allocation5 + $0xd8] ss:$12 sps:$4 sm:$0xff]   ;;  %v1521_v22 = vld [vmem:[#allocation5 + $0xf4] ss:$12 sps:$4 sm:$0xff]   ;;  %v1523_v23 = vld [vmem:[#allocation5 + $0xf0] ss:$12 sps:$4 sm:$0xff]  }
  0x5d   : > { %864 = vmatprep.mubr.bf16.mxu0 %v1263_v14  ;;  %946 = vmatprep.mubr.bf16.mxu1 %v1263_v14  ;;  %v1524_v24 = vld [vmem:[#allocation5 + $0x10c] ss:$12 sps:$4 sm:$0xff]   ;;  %v1526_v25 = vld [vmem:[#allocation5 + $0x108] ss:$12 sps:$4 sm:$0xff]   ;;  %v1527_v26 = vld [vmem:[#allocation5 + $0x124] ss:$12 sps:$4 sm:$0xff]  }
  0x5e   : > { %v1591_v27 = vld [vmem:[#allocation5 + $0xc8] ss:$12 sps:$4 sm:$0xff]   ;;  %v1529_v28 = vld [vmem:[#allocation5 + $0x120] ss:$12 sps:$4 sm:$0xff]   ;;  %v1595_v33 = vld [vmem:[#allocation5 + $0xf8] ss:$12 sps:$4 sm:$0xff]  }
  0x5f   : > { %837 = vmatpush1.bf16.msra.mxu0 %v1499_v5  ;;  %v1592_v29 = vld [vmem:[#allocation5 + $0x8] ss:$12 sps:$4 sm:$0xff]   ;;  %1368 = vmatprep.subr.bf16.mxu1 %v1591_v27  ;;  %v1593_v31 = vld [vmem:[#allocation5 + $0xe0] ss:$12 sps:$4 sm:$0xff]   ;;  %v1532_v34 = vld [vmem:[#allocation5 + $0x138] ss:$12 sps:$4 sm:$0xff]  }
  0x60   : > { %838 = vmatprep.subr.bf16.mxu0 %v1500_v6  ;;  %v1530_v30 = vld [vmem:[#allocation5 + $0x13c] ss:$12 sps:$4 sm:$0xff]   ;;  %1369 = vmatpush3.bf16.msra.mxu1 %v1592_v29  ;;  %v1594_v32 = vld [vmem:[#allocation5 + $0x20] ss:$12 sps:$4 sm:$0xff]   ;;  %v1596_v36 = vld [vmem:[#allocation5 + $0x38] ss:$12 sps:$4 sm:$0xff]  }
  0x61   : > { %1370 = vmatprep.subr.bf16.mxu1 %v1593_v31  ;;  %v1533_v35 = vld [vmem:[#allocation5 + $0x154] ss:$12 sps:$4 sm:$0xff]   ;;  %v1597_v37 = vld [vmem:[#allocation5 + $0x110] ss:$12 sps:$4 sm:$0xff]   ;;  %v1536_v39 = vld [vmem:[#allocation5 + $0x16c] ss:$12 sps:$4 sm:$0xff]  }
  0x62   : > { %v1535_v38 = vld [vmem:[#allocation5 + $0x150] ss:$12 sps:$4 sm:$0xff]   ;;  %v1599_v41 = vld [vmem:[#allocation5 + $0x128] ss:$12 sps:$4 sm:$0xff]   ;;  %v1601_v46 = vld [vmem:[#allocation5 + $0x140] ss:$12 sps:$4 sm:$0xff]  }
  0x63   : > { %839 = vmatpush1.bf16.msra.mxu0 %v1502_v7  ;;  %v1598_v40 = vld [vmem:[#allocation5 + $0x50] ss:$12 sps:$4 sm:$0xff]   ;;  %v1538_v42 = vld [vmem:[#allocation5 + $0x168] ss:$12 sps:$4 sm:$0xff]   ;;  %v1541_v48 = vld [vmem:[#allocation5 + $0x180] ss:$12 sps:$4 sm:$0xff]  }
  0x64   : > { %840 = vmatprep.subr.bf16.mxu0 %v1503_v8  ;;  %1371 = vmatpush3.bf16.msra.mxu1 %v1594_v32  ;;  %v1543_v43 = vld [vmem:[#allocation5 + $0x184] ss:$12 sps:$4 sm:$0xff]   ;;  %v1935_v44 = vld [vmem:[%s1919_s29 + $0x8] sm:$0xff]  ;;  %v1549_v54 = vld [vmem:[#allocation5 + $0x1b4] ss:$12 sps:$4 sm:$0xff]   ;;  %vm1071_vm2 = vcmask 64512  }
  0x65   : > { %1372 = vmatprep.subr.bf16.mxu1 %v1595_v33  ;;  %v1600_v45 = vld [vmem:[#allocation5 + $0x68] ss:$12 sps:$4 sm:$0xff]   ;;  %v1265_v50 = vcombine.high %v1935_v44, %v1935_v44  ;;  %v1602_v51 = vld [vmem:[#allocation5 + $0x80] ss:$12 sps:$4 sm:$0xff]   ;;  %v1603_v52 = vld [vmem:[#allocation5 + $0x158] ss:$12 sps:$4 sm:$0xff]  }
  0x66   : > { %v1546_v49 = vld [vmem:[#allocation5 + $0x19c] ss:$12 sps:$4 sm:$0xff]   ;;  %v1544_v53 = vld [vmem:[#allocation5 + $0x198] ss:$12 sps:$4 sm:$0xff]   ;;  %v1609_v0 = vld [vmem:[#allocation5 + $0x260] ss:$12 sps:$4 sm:$0xff]  }
  0x67   : > { %841 = vmatpush1.bf16.msra.mxu0 %v1505_v9  ;;  %v1604_v55 = vld [vmem:[#allocation5 + $0x98] ss:$12 sps:$4 sm:$0xff]   ;;  %v1605_v56 = vld [vmem:[#allocation5 + $0x170] ss:$12 sps:$4 sm:$0xff]   ;;  %v1607_v60 = vld [vmem:[#allocation5 + $0x248] ss:$12 sps:$4 sm:$0xff]  }
  0x68   : > { %842 = vmatprep.subr.bf16.mxu0 %v1506_v10  ;;  %1373 = vmatpush3.bf16.msra.mxu1 %v1596_v36  ;;  %v1547_v57 = vld [vmem:[#allocation5 + $0x1b0] ss:$12 sps:$4 sm:$0xff]   ;;  %v1552_v58 = vld [vmem:[#allocation5 + $0x1cc] ss:$12 sps:$4 sm:$0xff]   ;;  %v1550_v61 = vld [vmem:[#allocation5 + $0x1c8] ss:$12 sps:$4 sm:$0xff]  }
  0x69   : > { %1374 = vmatprep.subr.bf16.mxu1 %v1597_v37  ;;  %v1606_v59 = vld [vmem:[#allocation5 + $0xb0] ss:$12 sps:$4 sm:$0xff]   ;;  %v1608_v63 = vld [vmem:[#allocation5 + $0x188] ss:$12 sps:$4 sm:$0xff]   ;;  %v1553_v1 = vld [vmem:[#allocation5 + $0x1e0] ss:$12 sps:$4 sm:$0xff]  }
  0x6a   : > { %v1555_v62 = vld [vmem:[#allocation5 + $0x1e4] ss:$12 sps:$4 sm:$0xff]   ;;  %v1558_v2 = vld [vmem:[#allocation5 + $0x1fc] ss:$12 sps:$4 sm:$0xff]   ;;  %v1610_v3 = vld [vmem:[#allocation5 + $0x1a0] ss:$12 sps:$4 sm:$0xff]  }
  0x6b   : > { %843 = vmatpush1.bf16.msra.mxu0 %v1508_v11  ;;  %v1611_v4 = vld [vmem:[#allocation5 + $0x278] ss:$12 sps:$4 sm:$0xff]   ;;  %v1561_v6 = vld [vmem:[#allocation5 + $0x214] ss:$12 sps:$4 sm:$0xff]   ;;  %v1613_v8 = vld [vmem:[#allocation5 + $0x290] ss:$12 sps:$4 sm:$0xff]  }
  0x6c   : > { %844 = vmatprep.subr.bf16.mxu0 %v1509_v12  ;;  %1375 = vmatpush3.bf16.msra.mxu1 %v1598_v40  ;;  %v1556_v5 = vld [vmem:[#allocation5 + $0x1f8] ss:$12 sps:$4 sm:$0xff]   ;;  %v1559_v9 = vld [vmem:[#allocation5 + $0x210] ss:$12 sps:$4 sm:$0xff]   ;;  %v1615_v12 = vld [vmem:[#allocation5 + $0x2a8] ss:$12 sps:$4 sm:$0xff]  }
  0x6d   : > { %1376 = vmatprep.subr.bf16.mxu1 %v1599_v41  ;;  %v1612_v7 = vld [vmem:[#allocation5 + $0x1b8] ss:$12 sps:$4 sm:$0xff]   ;;  %v1614_v11 = vld [vmem:[#allocation5 + $0x1d0] ss:$12 sps:$4 sm:$0xff]   ;;  %v1562_v13 = vld [vmem:[#allocation5 + $0x228] ss:$12 sps:$4 sm:$0xff]  }
  0x6e   : > { %v1564_v10 = vld [vmem:[#allocation5 + $0x22c] ss:$12 sps:$4 sm:$0xff]   ;;  %v1567_v14 = vld [vmem:[#allocation5 + $0x244] ss:$12 sps:$4 sm:$0xff]   ;;  %v1582_v32 = vld [vmem:[#allocation5 + $0x2bc] ss:$12 sps:$4 sm:$0xff]  }
  0x6f   : > { %845 = vmatpush1.bf16.msra.mxu0 %v1511_v15  ;;  %v1616_v15 = vld [vmem:[#allocation5 + $0x1e8] ss:$12 sps:$4 sm:$0xff]   ;;  %v1622_v27 = vld [vmem:[#allocation5 + $0x230] ss:$12 sps:$4 sm:$0xff]   ;;  %v1577_v31 = vld [vmem:[#allocation5 + $0x2a0] ss:$12 sps:$4 sm:$0xff]  }
  0x70   : > { %846 = vmatprep.subr.bf16.mxu0 %v1512_v16  ;;  %1377 = vmatpush3.bf16.msra.mxu1 %v1600_v45  ;;  %v1617_v16 = vld [vmem:[#allocation5 + $0x2c0] ss:$12 sps:$4 sm:$0xff]   ;;  %v1579_v29 = vld [vmem:[#allocation5 + $0x2a4] ss:$12 sps:$4 sm:$0xff]   ;;  %v1586_v37 = vld [vmem:[#allocation5 + $0x2e8] ss:$12 sps:$4 sm:$0xff]  }
  0x71   : > { %1378 = vmatprep.subr.bf16.mxu1 %v1601_v46  ;;  %v1580_v33 = vld [vmem:[#allocation5 + $0x2b8] ss:$12 sps:$4 sm:$0xff]   ;;  %s1261_s15 = sshll.u32 %s1915_s20, 3  ;;  %s1364_s22 = sshll.u32 %s1800_s13, 7 }
  0x72   : > { %v1588_v36 = vld [vmem:[#allocation5 + $0x2ec] ss:$12 sps:$4 sm:$0xff]   ;;  %s174_s17 = scalar_lea.vmem [#allocation7], %s1261_s15  ;;  %s1952_s30 = scalar_lea.hbm %s1996_s2, %s1364_s22 }
  0x73   : > { %847 = vmatpush1.bf16.msra.mxu0 %v1514_v17  ;;  %v1565_v17 = vld [vmem:[#allocation5 + $0x240] ss:$12 sps:$4 sm:$0xff]   ;;  %s1171_s27 = sshll.u32 %s174_s17, 4  ;;  %s1158_s3 = scalar_lea.sflag [#allocation4], %s1915_s20  ;;  %s1947_s27 = int_to_ptr.vmem [resolvable:$true] %s1171_s27 }
  0x74   : > { %848 = vmatprep.subr.bf16.mxu0 %v1515_v18  ;;  %1379 = vmatpush3.bf16.msra.mxu1 %v1602_v51  ;;  %v1570_v18 = vld [vmem:[#allocation5 + $0x25c] ss:$12 sps:$4 sm:$0xff]   ;;  %s1685_s4 = scalar_lea.vmem %s1947_s27, 128  ;;  %s1763_s13 = smov [#allocation7]  }
  0x75   : > { %1380 = vmatprep.subr.bf16.mxu1 %v1603_v52  ;;  %p1686_p4 = scmp.ne.s32.totalorder %s1947_s27, %s1685_s4  ;;  %s1689_s5 = sshll.u32 %s1763_s13, 4  ;;  %s1690_s5 = int_to_ptr.vmem [resolvable:$false] %s1689_s5 }
  0x76   : > { %s1691_s6 = scalar_lea.vmem %s1690_s5, 256  ;;  %p1692_p10 = scmp.lt.s32.totalorder %s1947_s27, %s1690_s5 }
  0x77   : > { %849 = vmatpush1.bf16.msra.mxu0 %v1517_v19  ;;  %v1618_v19 = vld [vmem:[#allocation5 + $0x200] ss:$12 sps:$4 sm:$0xff]   ;;  %p1687_p6 = pnand %p1686_p4, %p1870_p12  ;;  %p1693_p13 = scmp.lt.s32.totalorder %s1691_s6, %s1685_s4 }
  0x78   : > { %850 = vmatprep.subr.bf16.mxu0 %v1518_v20  ;;  %1381 = vmatpush3.bf16.msra.mxu1 %v1604_v55  ;;  %v1619_v20 = vld [vmem:[#allocation5 + $0x2d8] ss:$12 sps:$4 sm:$0xff]  }
  0x79   : > { %1382 = vmatprep.subr.bf16.mxu1 %v1605_v56  ;;  %p1688_p8 = pneg %p1687_p6  ;;  %p1694_p3 = por %p1693_p13, %p1692_p10 }
  0x7b   : > { %851 = vmatpush1.bf16.msra.mxu0 %v1520_v21  ;;  %v1568_v21 = vld [vmem:[#allocation5 + $0x258] ss:$12 sps:$4 sm:$0xff]   ;;  %p1695_p7 = pnand %p1694_p3, %p1688_p8 }
  0x7c   : > { %852 = vmatprep.subr.bf16.mxu0 %v1521_v22  ;;  %1383 = vmatpush3.bf16.msra.mxu1 %v1606_v59  ;;  %v1573_v22 = vld [vmem:[#allocation5 + $0x274] ss:$12 sps:$4 sm:$0xff]  }
  0x7d   : > { %1390 = vmatprep.subr.bf16.mxu1 %v1607_v60 }
  0x7f   : > { %853 = vmatpush1.bf16.msra.mxu0 %v1523_v23  ;;  %947 = vmatmul.mubr.bf16.vlgmr.msra.gmra.mrb[0].mxu1 %v1262_v47  ;;  %v1620_v23 = vld [vmem:[#allocation5 + $0x218] ss:$12 sps:$4 sm:$0xff]  }
  0x80   : > { %854 = vmatprep.subr.bf16.mxu0 %v1524_v24  ;;  %1391 = vmatpush3.bf16.msra.mxu1 %v1608_v63  ;;  %v1621_v24 = vld [vmem:[#allocation5 + $0x2f0] ss:$12 sps:$4 sm:$0xff]  }
  0x81   : > { %1392 = vmatprep.subr.bf16.mxu1 %v1609_v0  ;;  %986 = vmatprep.mubr.bf16.mxu1 %v1265_v50 }
  0x83   : > { %855 = vmatpush1.bf16.msra.mxu0 %v1526_v25  ;;  %v1571_v25 = vld [vmem:[#allocation5 + $0x270] ss:$12 sps:$4 sm:$0xff]  }
  0x84   : > { %856 = vmatprep.subr.bf16.mxu0 %v1527_v26  ;;  %1393 = vmatpush3.bf16.msra.mxu1 %v1610_v3  ;;  %v1576_v26 = vld [vmem:[#allocation5 + $0x28c] ss:$12 sps:$4 sm:$0xff]  }
  0x85   : > { %1394 = vmatprep.subr.bf16.mxu1 %v1611_v4 }
  0x87   : > { %857 = vmatpush1.bf16.msra.mxu0 %v1529_v28  ;;  %v1574_v28 = vld [vmem:[#allocation5 + $0x288] ss:$12 sps:$4 sm:$0xff]  }
  0x88   : > { %858 = vmatprep.subr.bf16.mxu0 %v1530_v30  ;;  %1395 = vmatpush3.bf16.msra.mxu1 %v1612_v7  ;;  %v1264_v30 = vcombine.low %v1935_v44, %v1935_v44 }
  0x89   : > { %1396 = vmatprep.subr.bf16.mxu1 %v1613_v8 }
  0x8b   : > { %859 = vmatpush1.bf16.msra.mxu0 %v1532_v34  ;;  %v1585_v34 = vld [vmem:[#allocation5 + $0x2d4] ss:$12 sps:$4 sm:$0xff]  }
  0x8c   : > { %860 = vmatprep.subr.bf16.mxu0 %v1533_v35  ;;  %1397 = vmatpush3.bf16.msra.mxu1 %v1614_v11  ;;  %v1583_v35 = vld [vmem:[#allocation5 + $0x2d0] ss:$12 sps:$4 sm:$0xff]  }
  0x8d   : > { %1398 = vmatprep.subr.bf16.mxu1 %v1615_v12 }
  0x8f   : > { %861 = vmatpush1.bf16.msra.mxu0 %v1535_v38  ;;  %v1761_v38 = vmov 0.0  }
  0x90   : > { %862 = vmatprep.subr.bf16.mxu0 %v1536_v39  ;;  %1399 = vmatpush3.bf16.msra.mxu1 %v1616_v15 }
  0x91   : > { %1400 = vmatprep.subr.bf16.mxu1 %v1617_v16 }
  0x93   : > { %863 = vmatpush1.bf16.msra.mxu0 %v1538_v42 }
  0x94   : > { %873 = vmatprep.subr.bf16.mxu0 %v1543_v43  ;;  %1401 = vmatpush3.bf16.msra.mxu1 %v1618_v19 }
  0x95   : > { %1402 = vmatprep.subr.bf16.mxu1 %v1619_v20 }
  0x96   : > { %865 = vmatmul.mubr.bf16.vlgmr.msra.gmra.mrb[0].mxu0 %v1262_v47 }
  0x97   : > { %874 = vmatpush1.bf16.msra.mxu0 %v1541_v48  ;;  %905 = vmatprep.mubr.bf16.mxu0 %v1265_v50 }
  0x98   : > { %875 = vmatprep.subr.bf16.mxu0 %v1546_v49  ;;  %1403 = vmatpush3.bf16.msra.mxu1 %v1620_v23 }
  0x99   : > { %1404 = vmatprep.subr.bf16.mxu1 %v1621_v24 }
  0x9b   : > { %876 = vmatpush1.bf16.msra.mxu0 %v1544_v53 }
  0x9c   : > { %877 = vmatprep.subr.bf16.mxu0 %v1549_v54  ;;  %1405 = vmatpush3.bf16.msra.mxu1 %v1622_v27  ;;  %v1065_v54 = vlaneseq }
  0x9d   : > { %1416 = vmatprep.subr.mxu1 %v1761_v38 }
  0x9e   : > { %v1066_v55 = vshrl.u32 %v1065_v54, 7  ;;  %v1068_v56 = vand.u32 127, %v1065_v54 }
  0x9f   : > { %878 = vmatpush1.bf16.msra.mxu0 %v1547_v57  ;;  %987 = vmatmul.mubr.bf16.vlgmr.msra.gmra.mrb[4].mxu1 %v1264_v30 }
  0xa0   : > { %879 = vmatprep.subr.bf16.mxu0 %v1552_v58  ;;  %1418 = vmatprep.mubr.msk.f32.mxu1 %vm1762_vm0, %v1761_v38  ;;  %vm1069_vm1 = vcmp.le.s32.totalorder %v1068_v56, %v1066_v55 }
  0xa3   : > { %880 = vmatpush1.bf16.msra.mxu0 %v1550_v61 }
  0xa4   : > { %881 = vmatprep.subr.bf16.mxu0 %v1555_v62 }
  0xa7   : > { %882 = vmatpush1.bf16.msra.mxu0 %v1553_v1 }
  0xa8   : > { %883 = vmatprep.subr.bf16.mxu0 %v1558_v2 }
  0xab   : > { %884 = vmatpush1.bf16.msra.mxu0 %v1556_v5 }
  0xac   : > { %885 = vmatprep.subr.bf16.mxu0 %v1561_v6 }
  0xaf   : > { %886 = vmatpush1.bf16.msra.mxu0 %v1559_v9 }
  0xb0   : > { %887 = vmatprep.subr.bf16.mxu0 %v1564_v10 }
  0xb3   : > { %888 = vmatpush1.bf16.msra.mxu0 %v1562_v13 }
  0xb4   : > { %889 = vmatprep.subr.bf16.mxu0 %v1567_v14 }
  0xb7   : > { %890 = vmatpush1.bf16.msra.mxu0 %v1565_v17 }
  0xb8   : > { %891 = vmatprep.subr.bf16.mxu0 %v1570_v18 }
  0xbb   : > { %892 = vmatpush1.bf16.msra.mxu0 %v1568_v21 }
  0xbc   : > { %893 = vmatprep.subr.bf16.mxu0 %v1573_v22 }
  0xbf   : > { %894 = vmatpush1.bf16.msra.mxu0 %v1571_v25 }
  0xc0   : > { %895 = vmatprep.subr.bf16.mxu0 %v1576_v26 }
  0xc3   : > { %896 = vmatpush1.bf16.msra.mxu0 %v1574_v28 }
  0xc4   : > { %897 = vmatprep.subr.bf16.mxu0 %v1579_v29 }
  0xc7   : > { %898 = vmatpush1.bf16.msra.mxu0 %v1577_v31 }
  0xc8   : > { %899 = vmatprep.subr.bf16.mxu0 %v1582_v32 }
  0xcb   : > { %900 = vmatpush1.bf16.msra.mxu0 %v1580_v33 }
  0xcc   : > { %901 = vmatprep.subr.bf16.mxu0 %v1585_v34 }
  0xcf   : > { %902 = vmatpush1.bf16.msra.mxu0 %v1583_v35 }
  0xd0   : > { %903 = vmatprep.subr.bf16.mxu0 %v1588_v36 }
  0xd3   : > { %904 = vmatpush1.bf16.msra.mxu0 %v1586_v37 }
  0xd6   : > { %906 = vmatmul.mubr.bf16.vlgmr.msra.gmra.mrb[0].mxu0 %v1264_v30 }
 0x152   : > { %v1384_v39 = vpop.f32.mrb[0].mxu1 }
 0x153   : > { %v1385_v40 = vpop.f32.mrb[1].mxu1 }
 0x154   : > { %v1386_v41 = vadd.f32 %v1385_v40, %v1384_v39  ;;  %v1387_v42 = vpop.f32.mrb[2].mxu1 }
 0x155   : > { %v1388_v43 = vpop.f32.mrb[3].mxu1 }
 0x172   : > { %v1406_v44 = vpop.f32.mrb[4].mxu1 }
 0x173   : > { %v1407_v45 = vpop.f32.mrb[5].mxu1 }
 0x174   : > { %v1408_v46 = vadd.f32 %v1407_v45, %v1406_v44  ;;  %v1409_v47 = vpop.f32.mrb[6].mxu1 }
 0x175   : > { %v1410_v48 = vpop.f32.mrb[7].mxu1 }
 0x176   : > { %v989_v49 = vadd.f32 %v1408_v46, %v1386_v41 }
 0x1a9   : > { %v907_v50 = vpop.f32.mrb[0].mxu0 }
 0x1aa   : > { %v909_v51 = vpop.f32.mrb[1].mxu0  ;;  %1417 = vmatpush3.xpose.msra.mxu1 %v907_v50 }
 0x1ab   : > { %v911_v52 = vpop.f32.mrb[2].mxu0  ;;  %1421 = vmatprep.subr.mxu1 %v1761_v38 }
 0x1ac   : > { %v912_v53 = vpop.f32.mrb[3].mxu0 }
 0x1ad   : > { %1419 = vmatmul.mubr.f32.vlgmr.msra.gmra.mrb[8].mxu1 %v909_v51 }
 0x1ae   : > { %1422 = vmatpush3.msra.mxu1 %v989_v49  ;;  %1423 = vmatprep.mubr.msk.f32.mxu1 %vm1762_vm0, %v1761_v38 }
 0x280   : > { %v1060_v57 = vpop.f32.mrb[8].mxu1 }
 0x281   : > { %v1064_v58 = vmul.f32 0.046423834, %v1060_v57  ;;  %v1420_v59 = vpop.f32.mrb[9].mxu1 }
 0x283   : > { %v1070_v60 = vsel %vm1069_vm1, %v1064_v58, -1e+30 }
 0x284   : > { %v1072_v61 = vsel %vm1071_vm2, %v1070_v60, -inf }
 0x285   : > { %1073 = vmax.xlane.f32.xlu0 %v1072_v61 }
 0x312   : > { %v1074_v62 = vpop.xlane.xlu0 %1073 }
 0x313   : > { %v1075_v63 = vsub.f32 %v1070_v60, %v1074_v62 }
 0x315   : > { %v1076_v0 = vmul.f32 1.442695, %v1075_v63 }
 0x317   : > { %1623 = vpow2.f32 %v1076_v0 }
 0x321   : > { %v1624_v1 = vpop.eup %1623 }
 0x322   : > { %v1078_v2 = vsel %vm1071_vm2, %v1624_v1, 0.0 }
 0x323   : > { %1079 = vadd.xlane.f32.xlu0 %v1078_v2 }
 0x3b0   : > { %v1080_v3 = vpop.xlane.xlu0 %1079 }
 0x3b1   : > { %1625 = vrcp.f32 %v1080_v3 }
 0x3bb   : > { %v1626_v4 = vpop.eup %1625 }
 0x3bc   : > { %v1082_v5 = vmul.f32 %v1626_v4, %v1624_v1 }
 0x3be   : > { %1424 = vmatmul.mubr.msk.f32.vlgmr.msra.gmra.mrb[10].mxu1 %vm1071_vm2, %v1082_v5 }
 0x491   : > { %v1152_v6 = vpop.f32.mrb[10].mxu1 }
 0x492   : > { %1156 = vst [vmem:[%s174_s17] sm:$0xff] %v1152_v6  ;;  %v1425_v7 = vpop.f32.mrb[11].mxu1 }
 0x493   : > { %1698 = shalt.err (!%p1695_p7)
}
 0x494   : > { %s1699_s7 = scalar_lea.hbm %s1952_s30, 128  ;;  %s1703_s25 = scalar_lea.hbm %s1996_s2, 256 }
 0x495   : > { %p1700_p9 = scmp.ne.s32.totalorder %s1952_s30, %s1699_s7  ;;  %p1704_p0 = scmp.lt.u32.totalorder %s1952_s30, %s1996_s2 }
 0x496   : > { %p1705_p11 = scmp.lt.u32.totalorder %s1703_s25, %s1699_s7  ;;  %p1707_p4 = scmp.lt.u32.totalorder %s1699_s7, %s1952_s30 }
 0x497   : > { %p1701_p2 = pnand %p1700_p9, %p1870_p12 }
 0x498   : > { %p1706_p1 = por %p1705_p11, %p1704_p0 }
 0x499   : > { %p1702_p5 = pneg %p1701_p2 }
 0x49a   : > { %p1708_p6 = por %p1707_p4, %p1706_p1 }
 0x49c   : > { %p1709_p8 = pnand %p1708_p6, %p1702_p5 }
 0x49e   : > { %1712 = shalt.err (!%p1709_p8)
}
 0x49f   : > { %1436 = dma.vmem_to_hbm [thread:$0]  (%p1870_p12), %s1947_s27, 128, %s1952_s30, %s1158_s3  }
 0x4a0 PF: > { %s1183_s19 = sand.u32 1, %s1743_s9   ;;  %p2011_p10 = scmp.ne.s32.totalorder %s2001_s16, 0 }
 0x4a1   : > { %p2012_p13 = scmp.ge.s32.totalorder %s1755_s12, 2  ;;  %s1184_s29 = scalar_lea.sflag [#allocation4], %s1183_s19 }
 0x4a3   : > { %p1447_p3 = pnand %p2012_p13, %p2011_p10 }
 0x4a5   : > { %1738 = dma.done.wait (!%p1447_p3), %s1184_s29, 128  }
 0x4a6   : > { %1740 = vsyncadd (!%p1447_p3), %s1184_s29, 4294967168  ;;  %p16_p7 = scmp.ge.s32.totalorder %s1835_s21, 4   ;;  %s2013_s9 = smov %s1747_s10 }
 0x4a7   : > { %s2014_s10 = smov %s1751_s11  ;;  %s2015_s11 = smov %s1866_s8 }
 0x4a8   : > { %s2016_s12 = smov %s1835_s21  ;;  %18 = sbr.rel (!%p16_p7) target bundleno = 6 (0x6), region = 77 }
 0x4af   :  { %1189 = vsyncpa [#allocation3], 1 }
 0x4b0   :  { %1191 = vsyncpa [#allocation3 + $0x1], 1 }
 0x4b1   :  { %1192 = vsyncpa [#allocation6], 1 }
 0x4b2   :  { %1193 = vsyncpa [#allocation4], 1 }
 0x4b3   :  { %1195 = vsyncpa [#allocation4 + $0x1], 1 }

</bundles_post_ra>
